<compile_context>
chip_gen: v6e
topology: v6e:2x2x1
jax: 0.10.0
libtpu: 0.0.40
codegen_flags: <defaults>
</compile_context>

<pallas_src>
import jax
import jax.numpy as jnp
from jax.experimental import pallas as pl
from jax.experimental.pallas import tpu as pltpu

EPS = 1e-10
_LANE = 128


# -----------------------------------------------------------------------------
# Fused Pallas kernel:  conv1(z-folded)+ReLU+normalize -> conv2+ReLU+normalize
# -----------------------------------------------------------------------------
def _fused_basenet_kernel(x_ref, w1_ref, b1_ref, w2_ref, b2_ref, o1_ref, o2_ref):
    # x_ref: (Cin, T) lane tile of one image (batch dim squeezed by BlockSpec).
    x = x_ref[...]

    # Layer 1 (z_score already folded into w1/b1) + ReLU.
    h1 = jnp.dot(w1_ref[...], x, preferred_element_type=jnp.float32) + b1_ref[...]
    h1 = jnp.maximum(h1, 0.0)
    # normalize_activation epilogue: channel reduction (XLU) + EUP reciprocal
    # (approx=True -> vrcp on the otherwise-idle EUP slot).
    nf1 = jnp.sqrt(jnp.sum(h1 * h1, axis=0, keepdims=True))
    o1_ref[...] = (h1 * pl.reciprocal(nf1 + EPS, approx=True)).astype(o1_ref.dtype)

    # Layer 2 + ReLU, consuming h1 straight from VMEM/registers (no HBM trip).
    h2 = jnp.dot(w2_ref[...], h1, preferred_element_type=jnp.float32) + b2_ref[...]
    h2 = jnp.maximum(h2, 0.0)
    nf2 = jnp.sqrt(jnp.sum(h2 * h2, axis=0, keepdims=True))
    o2_ref[...] = (h2 * pl.reciprocal(nf2 + EPS, approx=True)).astype(o2_ref.dtype)


def _pick_lane_tile(n, hw):
    # `hw` is already a multiple of 128 (padded in the wrapper).  Prefer the
    # largest tile (per-step DMA >> ~0.35us fixed pipeline overhead) that keeps
    # >=2 total grid steps so the "parallel" axes can feed both v7x TCs.
    candidates = (32768, 16384, 8192, 4096, 2048, 1024, 512, 256, 128)
    for t in candidates:
        if hw % t == 0 and n * (hw // t) >= 2:
            return t
    for t in candidates:
        if hw % t == 0:
            return t
    return hw  # unreachable when hw is a multiple of 128


def fused_basenet_pallas(x_ncl, w1, b1, w2, b2):
    """x_ncl: (N, Cin, L) with L a multiple of 128. Returns two (N, Cout, L) f32."""
    N, Cin, L = x_ncl.shape
    C1 = w1.shape[0]
    C2 = w2.shape[0]
    T = _pick_lane_tile(N, L)
    grid = (N, L // T)

    # Memory-bound cost hint (~4 FLOP/byte).
    flops = 2 * (C1 * Cin + C2 * C1) * N * L
    bytes_accessed = 4 * (N * L * (Cin + C1 + C2) + C1 * Cin + C2 * C1 + C1 + C2)
    cost = pl.CostEstimate(flops=flops, transcendentals=2 * N * L,
                           bytes_accessed=bytes_accessed)

    return pl.pallas_call(
        _fused_basenet_kernel,
        out_shape=(
            jax.ShapeDtypeStruct((N, C1, L), jnp.float32),
            jax.ShapeDtypeStruct((N, C2, L), jnp.float32),
        ),
        grid=grid,
        in_specs=[
            # Activations in natural (N, Cin, H*W) layout; batch dim squeezed.
            pl.BlockSpec((None, Cin, T), lambda n, i: (n, 0, i)),
            # Weights / biases: grid-invariant blocks (fetched once into VMEM).
            pl.BlockSpec((C1, Cin), lambda n, i: (0, 0)),
            pl.BlockSpec((C1, 1), lambda n, i: (0, 0)),
            pl.BlockSpec((C2, C1), lambda n, i: (0, 0)),
            pl.BlockSpec((C2, 1), lambda n, i: (0, 0)),
        ],
        out_specs=(
            pl.BlockSpec((None, C1, T), lambda n, i: (n, 0, i)),
            pl.BlockSpec((None, C2, T), lambda n, i: (n, 0, i)),
        ),
        compiler_params=pltpu.CompilerParams(
            dimension_semantics=("parallel", "parallel")),
        cost_estimate=cost,
    )(x_ncl, w1, b1, w2, b2)


# -----------------------------------------------------------------------------
# BaseNet forward (JAX glue reproducing the PyTorch control flow)
# -----------------------------------------------------------------------------
class BaseNetPallas:
    def __init__(self):
        # buffers from BaseNet.__init__ ([1, 3, 1, 1] -> stored as (3,))
        self.mean = jnp.array([-0.03, -0.088, -0.188], jnp.float32)
        self.std = jnp.array([0.458, 0.448, 0.45], jnp.float32)

        # TODO(synk): BaseNet is abstract — `self.layers` / `self.target_layers`
        # come from subclasses (AlexNet/VGG16/SqueezeNet); a small deterministic
        # 1x1-conv+ReLU stack stands in to exercise the forward loop.
        key = jax.random.PRNGKey(42)
        k1, k2, k3, k4 = jax.random.split(key, 4)
        c0, c1, c2 = 3, 16, 16
        self.layers = [
            (0.1 * jax.random.normal(k1, (c1, c0), jnp.float32),
             0.1 * jax.random.normal(k2, (c1, 1), jnp.float32)),
            (0.1 * jax.random.normal(k3, (c2, c1), jnp.float32),
             0.1 * jax.random.normal(k4, (c2, 1), jnp.float32)),
        ]
        self.target_layers = {1, 2}

    def forward(self, x_nchw):
        N, C, H, W = x_nchw.shape
        HW = H * W
        HW_pad = ((HW + _LANE - 1) // _LANE) * _LANE

        # Free reshape to the kernel's natural layout (no transpose / data move).
        x_ncl = x_nchw.reshape(N, C, HW).astype(jnp.float32)
        if HW_pad != HW:
            x_ncl = jnp.pad(x_ncl, ((0, 0), (0, 0), (0, HW_pad - HW)))

        # Fold z_score into conv1:  w1' = w1/std,  b1' = b1 - w1 @ (mean/std)
        (w1, b1), (w2, b2) = self.layers
        inv_std = 1.0 / self.std
        w1_eff = w1 * inv_std[None, :]
        b1_eff = b1 - w1 @ (self.mean * inv_std)[:, None]

        o1, o2 = fused_basenet_pallas(x_ncl, w1_eff, b1_eff, w2, b2)

        outs = []
        for o in (o1, o2):  # both layers are target_layers -> normalized outputs
            cout = o.shape[1]
            outs.append(o[:, :, :HW].reshape(N, cout, H, W))  # free when no padding
        return outs


# -----------------------------------------------------------------------------
# Pure-JAX reference (faithful to the PyTorch module, NCHW, unfused)
# -----------------------------------------------------------------------------
def _reference_forward(net, x_nchw):
    mean = net.mean.reshape(1, 3, 1, 1)
    std = net.std.reshape(1, 3, 1, 1)
    x = (x_nchw - mean) / std                       # z_score
    out = []
    for i, (w, b) in enumerate(net.layers, 1):      # loop over layers
        x = jnp.maximum(
            jnp.einsum("oc,nchw->nohw", w, x) + b.reshape(1, -1, 1, 1), 0.0)
        if i in net.target_layers:
            nf = jnp.sqrt(jnp.sum(x * x, axis=1, keepdims=True))
            out.append(x / (nf + EPS))              # normalize_activation
        if len(out) == len(net.target_layers):
            break
    return out


if __name__ == "__main__":
    key = jax.random.PRNGKey(0)
    x = jax.random.normal(key, (2, 3, 16, 16), jnp.float32)  # NCHW like PyTorch

    net = BaseNetPallas()
    outs = net.forward(x)
    outs = [jax.block_until_ready(o) for o in outs]

    refs = _reference_forward(net, x)
    for o, r in zip(outs, refs):
        assert o.shape == r.shape, (o.shape, r.shape)
        # Tolerance relaxed vs. the exact-divide reference: z_score is folded
        # into conv1's weights and the normalization uses the EUP approx
        # reciprocal (normalized outputs are <=1 in magnitude, so 2e-3 abs is safe).
        assert jnp.allclose(o, r, atol=2e-3, rtol=2e-3), float(jnp.max(jnp.abs(o - r)))

    print("KERNEL_OK")
</pallas_src>

<mosaic_0001>
module attributes {stable_mosaic.version = 11 : i64} {
  func.func @_fused_basenet_kernel(%arg0: i32, %arg1: i32, %arg2: memref<1x3x256xf32, #tpu.memory_space<vmem>>, %arg3: memref<16x3xf32, #tpu.memory_space<vmem>>, %arg4: memref<16x1xf32, #tpu.memory_space<vmem>>, %arg5: memref<16x16xf32, #tpu.memory_space<vmem>>, %arg6: memref<16x1xf32, #tpu.memory_space<vmem>>, %arg7: memref<1x16x256xf32, #tpu.memory_space<vmem>>, %arg8: memref<1x16x256xf32, #tpu.memory_space<vmem>>) attributes {dimension_semantics = [#tpu.dimension_semantics<parallel>, #tpu.dimension_semantics<parallel>], iteration_bounds = array<i64: 2, 1>, scalar_prefetch = 0 : i64, scratch_operands = 0 : i64, tpu.core_type = #tpu.core_type<tc>, window_params = [{transform_indices = @transform_0, window_bounds = array<i64: 1, 3, 256>}, {pipeline_mode = #tpu.pipeline_mode<synchronous>, transform_indices = @transform_1, window_bounds = array<i64: 16, 3>}, {pipeline_mode = #tpu.pipeline_mode<synchronous>, transform_indices = @transform_2, window_bounds = array<i64: 16, 1>}, {pipeline_mode = #tpu.pipeline_mode<synchronous>, transform_indices = @transform_3, window_bounds = array<i64: 16, 16>}, {pipeline_mode = #tpu.pipeline_mode<synchronous>, transform_indices = @transform_4, window_bounds = array<i64: 16, 1>}, {transform_indices = @transform_5, window_bounds = array<i64: 1, 16, 256>}, {transform_indices = @transform_6, window_bounds = array<i64: 1, 16, 256>}]} {
    %c0 = arith.constant 0 : index
    %c0_0 = arith.constant 0 : index
    %c0_1 = arith.constant 0 : index
    %0 = vector.load %arg2[%c0, %c0_0, %c0_1] : memref<1x3x256xf32, #tpu.memory_space<vmem>>, vector<1x3x256xf32>
    %1 = vector.shape_cast %0 : vector<1x3x256xf32> to vector<3x256xf32>
    %c0_2 = arith.constant 0 : index
    %c0_3 = arith.constant 0 : index
    %2 = vector.load %arg3[%c0_2, %c0_3] : memref<16x3xf32, #tpu.memory_space<vmem>>, vector<16x3xf32>
    %cst = arith.constant dense<0.000000e+00> : vector<16x256xf32>
    %3 = tpu.matmul %2, %1, %cst {dimension_numbers = #tpu.dot_dimension_numbers<[1], [0], [0], [1], [0, 0, 1, 1], [], []>} : vector<16x3xf32>, vector<3x256xf32>, vector<16x256xf32> -> vector<16x256xf32>
    %c0_4 = arith.constant 0 : index
    %c0_5 = arith.constant 0 : index
    %4 = vector.load %arg4[%c0_4, %c0_5] : memref<16x1xf32, #tpu.memory_space<vmem>>, vector<16x1xf32>
    %5 = vector.broadcast %4 : vector<16x1xf32> to vector<16x256xf32>
    %6 = arith.addf %3, %5 : vector<16x256xf32>
    %cst_6 = arith.constant 0.000000e+00 : f32
    %7 = vector.broadcast %cst_6 : f32 to vector<16x256xf32>
    %8 = arith.maximumf %6, %7 : vector<16x256xf32>
    %9 = arith.mulf %8, %8 : vector<16x256xf32>
    %cst_7 = arith.constant dense<0.000000e+00> : vector<256xf32>
    %10 = vector.multi_reduction <add>, %9, %cst_7 [0] : vector<16x256xf32> to vector<256xf32>
    %11 = vector.shape_cast %10 : vector<256xf32> to vector<1x256xf32>
    %12 = math.sqrt %11 : vector<1x256xf32>
    %cst_8 = arith.constant 1.000000e-10 : f32
    %13 = vector.broadcast %cst_8 : f32 to vector<1x256xf32>
    %14 = arith.addf %12, %13 : vector<1x256xf32>
    %15 = tpu.reciprocal %14 {approx = true} : vector<1x256xf32> -> vector<1x256xf32>
    %16 = vector.broadcast %15 : vector<1x256xf32> to vector<16x256xf32>
    %17 = arith.mulf %8, %16 : vector<16x256xf32>
    %c0_9 = arith.constant 0 : index
    %c0_10 = arith.constant 0 : index
    %c0_11 = arith.constant 0 : index
    %18 = vector.load %arg7[%c0_9, %c0_10, %c0_11] : memref<1x16x256xf32, #tpu.memory_space<vmem>>, vector<1x16x256xf32>
    %19 = vector.shape_cast %18 : vector<1x16x256xf32> to vector<16x256xf32>
    %20 = vector.shape_cast %17 : vector<16x256xf32> to vector<1x16x256xf32>
    tpu.vector_store %arg7[%c0_9, %c0_10, %c0_11], %20 {strides = array<i32>} : memref<1x16x256xf32, #tpu.memory_space<vmem>>, vector<1x16x256xf32>,
    %c0_12 = arith.constant 0 : index
    %c0_13 = arith.constant 0 : index
    %21 = vector.load %arg5[%c0_12, %c0_13] : memref<16x16xf32, #tpu.memory_space<vmem>>, vector<16x16xf32>
    %cst_14 = arith.constant dense<0.000000e+00> : vector<16x256xf32>
    %22 = tpu.matmul %21, %8, %cst_14 {dimension_numbers = #tpu.dot_dimension_numbers<[1], [0], [0], [1], [0, 0, 1, 1], [], []>} : vector<16x16xf32>, vector<16x256xf32>, vector<16x256xf32> -> vector<16x256xf32>
    %c0_15 = arith.constant 0 : index
    %c0_16 = arith.constant 0 : index
    %23 = vector.load %arg6[%c0_15, %c0_16] : memref<16x1xf32, #tpu.memory_space<vmem>>, vector<16x1xf32>
    %24 = vector.broadcast %23 : vector<16x1xf32> to vector<16x256xf32>
    %25 = arith.addf %22, %24 : vector<16x256xf32>
    %cst_17 = arith.constant 0.000000e+00 : f32
    %26 = vector.broadcast %cst_17 : f32 to vector<16x256xf32>
    %27 = arith.maximumf %25, %26 : vector<16x256xf32>
    %28 = arith.mulf %27, %27 : vector<16x256xf32>
    %cst_18 = arith.constant dense<0.000000e+00> : vector<256xf32>
    %29 = vector.multi_reduction <add>, %28, %cst_18 [0] : vector<16x256xf32> to vector<256xf32>
    %30 = vector.shape_cast %29 : vector<256xf32> to vector<1x256xf32>
    %31 = math.sqrt %30 : vector<1x256xf32>
    %cst_19 = arith.constant 1.000000e-10 : f32
    %32 = vector.broadcast %cst_19 : f32 to vector<1x256xf32>
    %33 = arith.addf %31, %32 : vector<1x256xf32>
    %34 = tpu.reciprocal %33 {approx = true} : vector<1x256xf32> -> vector<1x256xf32>
    %35 = vector.broadcast %34 : vector<1x256xf32> to vector<16x256xf32>
    %36 = arith.mulf %27, %35 : vector<16x256xf32>
    %c0_20 = arith.constant 0 : index
    %c0_21 = arith.constant 0 : index
    %c0_22 = arith.constant 0 : index
    %37 = vector.load %arg8[%c0_20, %c0_21, %c0_22] : memref<1x16x256xf32, #tpu.memory_space<vmem>>, vector<1x16x256xf32>
    %38 = vector.shape_cast %37 : vector<1x16x256xf32> to vector<16x256xf32>
    %39 = vector.shape_cast %36 : vector<16x256xf32> to vector<1x16x256xf32>
    tpu.vector_store %arg8[%c0_20, %c0_21, %c0_22], %39 {strides = array<i32>} : memref<1x16x256xf32, #tpu.memory_space<vmem>>, vector<1x16x256xf32>,
    return
  }
  func.func @transform_0(%arg0: i32, %arg1: i32) -> (i32, i32, i32) {
    %c0_i32 = arith.constant 0 : i32
    %c0_i32_0 = arith.constant 0 : i32
    return %arg0, %c0_i32, %arg1 : i32, i32, i32
  }
  func.func @transform_1(%arg0: i32, %arg1: i32) -> (i32, i32) {
    %c0_i32 = arith.constant 0 : i32
    %c0_i32_0 = arith.constant 0 : i32
    %c0_i32_1 = arith.constant 0 : i32
    return %c0_i32, %c0_i32_0 : i32, i32
  }
  func.func @transform_2(%arg0: i32, %arg1: i32) -> (i32, i32) {
    %c0_i32 = arith.constant 0 : i32
    %c0_i32_0 = arith.constant 0 : i32
    %c0_i32_1 = arith.constant 0 : i32
    return %c0_i32, %c0_i32_0 : i32, i32
  }
  func.func @transform_3(%arg0: i32, %arg1: i32) -> (i32, i32) {
    %c0_i32 = arith.constant 0 : i32
    %c0_i32_0 = arith.constant 0 : i32
    %c0_i32_1 = arith.constant 0 : i32
    return %c0_i32, %c0_i32_0 : i32, i32
  }
  func.func @transform_4(%arg0: i32, %arg1: i32) -> (i32, i32) {
    %c0_i32 = arith.constant 0 : i32
    %c0_i32_0 = arith.constant 0 : i32
    %c0_i32_1 = arith.constant 0 : i32
    return %c0_i32, %c0_i32_0 : i32, i32
  }
  func.func @transform_5(%arg0: i32, %arg1: i32) -> (i32, i32, i32) {
    %c0_i32 = arith.constant 0 : i32
    %c0_i32_0 = arith.constant 0 : i32
    return %arg0, %c0_i32, %arg1 : i32, i32, i32
  }
  func.func @transform_6(%arg0: i32, %arg1: i32) -> (i32, i32, i32) {
    %c0_i32 = arith.constant 0 : i32
    %c0_i32_0 = arith.constant 0 : i32
    return %arg0, %c0_i32, %arg1 : i32, i32, i32
  }
}

</mosaic_0001>

<bundles_post_ra>
// kernel: tpu_custom_call.1
= control target key start
LH: loop header
LB: loop body
LE: loop exit
PB: predicated region body
PF: predicated region fallthrough
CT: control target
= control target key end

     0   :  { %12 = vsyncpa [#allocation3], 0  ;;  %s1189_s0 = inlined_call_operand.vmem [shape: f32[2,3,256], index: 0, kind: input, shape index: {}]   ;;  %s1190_s1 = inlined_call_operand.vmem [shape: f32[16,3], index: 1, kind: input, shape index: {}]   ;;  %s1191_s2 = inlined_call_operand.vmem [shape: f32[16,1], index: 2, kind: input, shape index: {}]   ;;  %s1192_s3 = inlined_call_operand.vmem [shape: f32[16,16], index: 3, kind: input, shape index: {}]   ;;  %s1193_s4 = inlined_call_operand.vmem [shape: f32[16,1], index: 4, kind: input, shape index: {}]   ;;  %s1194_s5 = inlined_call_operand.hbm [shape: f32[2,16,256], index: 5, kind: output, shape index: {0}]   ;;  %s1195_s6 = inlined_call_operand.hbm [shape: f32[2,16,256], index: 6, kind: output, shape index: {1}]  }
   0x1   :  { %14 = vsyncpa [#allocation3 + $0x1], 0 }
   0x2   :  { %15 = vsyncpa [#allocation5], 0 }
   0x3   :  { %17 = vsyncpa [#allocation5 + $0x1], 0  ;;  %s1006_s21 = smov 0   ;;  %s1008_s22 = smov 0  }
   0x4   :  { %s1010_s23 = smov 0   ;;  %s1012_s24 = smov 0  }
   0x5   :  { %s1014_s25 = smov 0   ;;  %s1016_s26 = smov 0  }
   0x6 LB: > { %s748_s27 = sadd.s32 4294967295, %s963_s26   ;;  %s749_s28 = sadd.s32 4294967294, %s963_s26   ;;  %s963_s26 = sphi %s1016_s26, %s23_s26   ;;  %s959_s25 = sphi %s1014_s25, %s1204_s25   ;;  %s955_s24 = sphi %s1012_s24, %s1203_s24   ;;  %s951_s23 = sphi %s1010_s23, %s1202_s23   ;;  %s947_s22 = sphi %s1008_s22, %s1201_s22   ;;  %s943_s21 = sphi %s1006_s21, %s1200_s21  }
   0x7   : > { %s35_s29 = sadd.s32 1, %s959_s25  ;;  %s156_s30 = sadd.s32 1, %s951_s23 }
   0x8   : > { %p37_p0 = scmp.ge.s32.totalorder %s35_s29, 2  ;;  %p166_p1 = scmp.ne.s32.totalorder %s951_s23, %s947_s22 }
   0x9   : > { %p167_p2 = scmp.eq.s32.totalorder %s748_s27, 1  ;;  %p172_p3 = scmp.ne.s32.totalorder %s947_s22, %s943_s21 }
   0xa   : > { %s1206_s29 = smov (%p37_p0, %s35_s29), 0  ;;  %p173_p5 = scmp.eq.s32.totalorder %s749_s28, 1 }
   0xb   : > { %p1046_p4 = por %p167_p2, %p166_p1  ;;  %s151_s8 = ssub.s32 %s959_s25, %s1206_s29 }
   0xc   : > { %p752_p6 = scmp.ge.s32.totalorder %s963_s26, 1  ;;  %p154_p7 = scmp.eq.s32.totalorder %s151_s8, 0 }
   0xd   : > { %p1053_p8 = por %p173_p5, %p172_p3  ;;  %p244_p9 = scmp.lt.s32.totalorder %s963_s26, 3 }
   0xe   : > { %s1059_s10 = scalar_select %p154_p7, %s951_s23, %s156_s30  }
   0xf   : > { %p245_p10 = pnand %p752_p6, %p244_p9 }
  0x10   : > { %p284_p11 = scmp.lt.s32.totalorder (!%p245_p10), %s955_s24, 1  ;;  %s1091_s18 = sand.u32 (!%p245_p10), 1, %s947_s22  }
  0x11   : > { %248 = sbr.rel (%p245_p10) target bundleno = 506 (0x1fa), region = 40  ;;  %s1196_s27 = sshll.u32 (!%p245_p10), %s955_s24, 9 }
  0x12   : > { %s1102_s11 = scalar_lea.hbm (!%p245_p10), %s1194_s5, %s1196_s27  ;;  %s596_s12 = scalar_lea.sflag (!%p245_p10), [#allocation3], %s1091_s18 }
  0x16   : > { %v965_v0 = vmov 0.0   ;;  %v299_v1 = vld [vmem:[%s1191_s2 + $0x8] sm:$0xff]  ;;  %s285_s13 = scalar_select %p284_p11, %s955_s24, 1  ;;  %v966_v2 = vmov 0   ;;  %v298_v3 = vld [vmem:[%s1191_s2] sm:$0xff]  ;;  %vm319_vm0 = vcmask 1042432  }
  0x17   : > { %388 = vmatprep.mubr.f32.mxu0 %v965_v0  ;;  %534 = vmatprep.mubr.f32.mxu1 %v965_v0  ;;  %v296_v6 = vld [vmem:[%s1190_s1] sm:$0xff]  ;;  %vm312_vm1 = vcmask 23552   ;;  %v297_v7 = vld [vmem:[%s1190_s1 + $0x8] sm:$0xff]  ;;  %vm463_vm2 = vcmask 130048  }
  0x18   : > { %838 = vset.pattern.permute.xlu0 %v966_v2  ;;  %839 = vset.pattern.permute.xlu1 %v966_v2  ;;  %s771_s14 = sshll.u32 %s285_s13, 3  ;;  %v451_v8 = vld [vmem:[%s1193_s4] sm:$0xff]  ;;  %v452_v9 = vld [vmem:[%s1193_s4 + $0x8] sm:$0xff] }
  0x19   : > { %307 = vperm.xlu0 %838, %v299_v1   ;;  %s291_s19 = scalar_lea.vmem %s1189_s0, %s771_s14  ;;  %455 = vperm.xlu1 %839, %v451_v8   ;;  %v449_v29 = vld [vmem:[%s1192_s3] sm:$0xff]  ;;  %v450_v34 = vld [vmem:[%s1192_s3 + $0x8] sm:$0xff]  ;;  %s967_s14 = smov [#allocation2]  }
  0x1a   : > { %v295_v4 = vld [vmem:[%s291_s19] sm:$0x77]  ;;  %s753_s19 = sshll.u32 %s1091_s18, 5  ;;  %s861_s15 = sshll.u32 %s967_s14, 4  ;;  %s862_s15 = int_to_ptr.vmem [resolvable:$false] %s861_s15 }
  0x1b   : > { %v311_v5 = vcombine.high %v295_v4, %v295_v4  ;;  %s275_s20 = scalar_lea.vmem [#allocation2], %s753_s19  ;;  %s863_s16 = scalar_lea.vmem %s862_s15, 1024 }
  0x1c   : > { %s616_s28 = sshll.u32 %s275_s20, 4  ;;  %s1104_s28 = int_to_ptr.vmem [resolvable:$true] %s616_s28 }
  0x1d   : > { %302 = vperm.xlu0 %838, %v298_v3   ;;  %757 = vmatprep.subr.msk.mxu0 %vm319_vm0, %v311_v5  ;;  %s857_s13 = scalar_lea.vmem %s1104_s28, 512  ;;  %p864_p1 = scmp.lt.s32.totalorder %s1104_s28, %s862_s15 }
  0x1e   : > { %758 = vmatpush1.msk.msra.mxu0 %vm319_vm0, %v295_v4  ;;  %460 = vperm.xlu1 %839, %v452_v9   ;;  %p858_p12 = scmp.ne.s32.totalorder %s1104_s28, %s857_s13  ;;  %p865_p2 = scmp.lt.s32.totalorder %s863_s16, %s857_s13 }
  0x1f   : > { %759 = vmatmul.mubr.msk.f32.vlgmr.msra.gmra.mxu0 %vm312_vm1, %v296_v6 }
  0x20   : > { %394 = vmatprep.mubr.f32.mxu0 %v965_v0  ;;  %p859_p13 = pnand %p858_p12, %p1046_p4  ;;  %p866_p3 = por %p865_p2, %p864_p1 }
  0x22   : > { %p860_p0 = pneg %p859_p13 }
  0x23   : > { %760 = vmatmul.mubr.msk.f32.gmra.mxu0 %vm312_vm1, %v297_v7 }
  0x24   : > { %p867_p5 = pnand %p866_p3, %p860_p0 }
  0x94   : > { %v308_v10 = vpop.permute.xlu0 %307 }
  0x98   : > { %v303_v11 = vpop.permute.xlu0 %302 }
  0xdf   : > { %v390_v12 = vpop.f32.mrf.mxu0 }
  0xe0   : > { %v391_v13 = vadd.f32 %v390_v12, %v303_v11 }
  0xe1   : > { %v392_v14 = vpop.f32.mrf.mxu0 }
  0xe2   : > { %v393_v15 = vadd.f32 %v392_v14, %v303_v11  ;;  %v401_v17 = vmax.f32 %v391_v13, 0.0 }
  0xe3   : > { %v396_v16 = vpop.f32.mrf.mxu0 }
  0xe4   : > { %v397_v18 = vadd.f32 %v396_v16, %v308_v10  ;;  %v402_v20 = vmax.f32 %v393_v15, 0.0  ;;  %v405_v23 = vmul.f32 %v401_v17, %v401_v17 }
  0xe5   : > { %v398_v19 = vpop.f32.mrf.mxu0 }
  0xe6   : > { %v403_v21 = vmax.f32 %v397_v18, 0.0  ;;  %v399_v22 = vadd.f32 %v398_v19, %v308_v10  ;;  %v406_v26 = vmul.f32 %v402_v20, %v402_v20 }
  0xe8   : > { %v407_v24 = vmul.f32 %v403_v21, %v403_v21  ;;  %v404_v25 = vmax.f32 %v399_v22, 0.0 }
  0xea   : > { %v409_v27 = vadd.f32 %v407_v24, %v405_v23  ;;  %v408_v28 = vmul.f32 %v404_v25, %v404_v25  ;;  %498 = vmatprep.subr.mxu1 %v404_v25 }
  0xeb   : > { %499 = vmatpush1.msra.mxu1 %v403_v21 }
  0xec   : > { %v410_v30 = vrot.slane %v409_v27, 4  ;;  %v416_v31 = vadd.f32 %v408_v28, %v406_v26  ;;  %500 = vmatprep.subr.mxu1 %v402_v20 }
  0xed   : > { %501 = vmatpush1.msra.mxu1 %v401_v17 }
  0xee   : > { %v411_v32 = vadd.f32 %v410_v30, %v409_v27  ;;  %v417_v33 = vrot.slane %v416_v31, 4  ;;  %761 = vmatmul.mubr.msk.f32.vlgmr.msra.gmra.mxu1 %vm463_vm2, %v449_v29 }
  0xef   : > { %540 = vmatprep.mubr.f32.mxu1 %v965_v0 }
  0xf0   : > { %v412_v35 = vrot.slane %v411_v32, 2  ;;  %v418_v36 = vadd.f32 %v417_v33, %v416_v31 }
  0xf2   : > { %v413_v37 = vadd.f32 %v412_v35, %v411_v32  ;;  %v419_v38 = vrot.slane %v418_v36, 2  ;;  %762 = vmatmul.mubr.msk.f32.gmra.mxu1 %vm463_vm2, %v450_v34 }
  0xf4   : > { %v414_v39 = vrot.slane %v413_v37, 1  ;;  %v420_v40 = vadd.f32 %v419_v38, %v418_v36 }
  0xf6   : > { %v415_v41 = vadd.f32 %v414_v39, %v413_v37  ;;  %v421_v42 = vrot.slane %v420_v40, 1 }
  0xf8   : > { %841 = vrsqrt.f32 %v415_v41  ;;  %v422_v43 = vadd.f32 %v421_v42, %v420_v40  ;;  %vm425_vm3 = vcmp.eq.f32.partialorder %v415_v41, inf  ;;  %v428_v46 = vand.u32 2147483648, %v415_v41 }
  0xf9   : > { %vm427_vm4 = vcmp.eq.f32.partialorder %v415_v41, 0.0 }
  0xfa   : > { %843 = vrsqrt.f32 %v422_v43  ;;  %vm432_vm5 = vcmp.eq.f32.partialorder %v422_v43, inf  ;;  %v435_v52 = vand.u32 2147483648, %v422_v43  ;;  %vm434_vm6 = vcmp.eq.f32.partialorder %v422_v43, 0.0 }
 0x105   : > { %v842_v44 = vpop.eup %841 }
 0x106   : > { %v424_v45 = vmul.f32 %v842_v44, %v415_v41 }
 0x107   : > { %v844_v47 = vpop.eup %843 }
 0x108   : > { %v426_v48 = vsel %vm425_vm3, %v415_v41, %v424_v45  ;;  %v431_v50 = vmul.f32 %v844_v47, %v422_v43 }
 0x109   : > { %v429_v49 = vsel %vm427_vm4, %v428_v46, %v426_v48 }
 0x10a   : > { %v437_v51 = vadd.f32 1e-10, %v429_v49  ;;  %v433_v53 = vsel %vm432_vm5, %v422_v43, %v431_v50 }
 0x10b   : > { %v436_v54 = vsel %vm434_vm6, %v435_v52, %v433_v53 }
 0x10c   : > { %845 = vrcp.f32 %v437_v51  ;;  %v438_v55 = vadd.f32 1e-10, %v436_v54 }
 0x10e   : > { %847 = vrcp.f32 %v438_v55 }
 0x119   : > { %v846_v56 = vpop.eup %845 }
 0x11a   : > { %v443_v57 = vmul.f32 %v846_v56, %v403_v21  ;;  %v441_v58 = vmul.f32 %v846_v56, %v401_v17 }
 0x11b   : > { %v848_v59 = vpop.eup %847 }
 0x11c   : > { %447 = vst [vmem:[%s275_s20 + $0x10] sm:$0xff] %v443_v57  ;;  %445 = vst [vmem:[%s275_s20] sm:$0xff] %v441_v58  ;;  %v444_v60 = vmul.f32 %v848_v59, %v404_v25  ;;  %v442_v61 = vmul.f32 %v848_v59, %v402_v20 }
 0x11e   : > { %448 = vst [vmem:[%s275_s20 + $0x18] sm:$0xff] %v444_v60  ;;  %446 = vst [vmem:[%s275_s20 + $0x8] sm:$0xff] %v442_v61 }
 0x11f   : > { %870 = shalt.err (!%p867_p5)
}
 0x120   : > { %s871_s17 = scalar_lea.hbm %s1102_s11, 512  ;;  %s875_s8 = scalar_lea.hbm %s1194_s5, 1024 }
 0x121   : > { %p872_p6 = scmp.ne.s32.totalorder %s1102_s11, %s871_s17  ;;  %p876_p10 = scmp.lt.s32.totalorder %s1102_s11, %s1194_s5 }
 0x122   : > { %p877_p11 = scmp.lt.s32.totalorder %s875_s8, %s871_s17 }
 0x123   : > { %p873_p7 = pnand %p872_p6, %p1046_p4 }
 0x124   : > { %p878_p12 = por %p877_p11, %p876_p10 }
 0x125   : > { %p874_p9 = pneg %p873_p7 }
 0x127   : > { %p879_p13 = pnand %p878_p12, %p874_p9 }
 0x129   : > { %882 = shalt.err (!%p879_p13)
}
 0x12a   : > { %s968_s13 = smov 256   ;;  %s969_s15 = smov 16   ;;  %v456_v62 = vpop.permute.xlu1 %455 }
 0x12b   : > { %774 = dma.vmem_to_hbm [thread:$0]  (%p1046_p4), %s1104_s28, 512, %s1102_s11, %s596_s12, %s968_s13, %s968_s13, %s969_s15  }
 0x12c   : > { %s282_s27 = scalar_lea.vmem [#allocation4], %s753_s19  ;;  %s1199_s11 = sshll.u32 %s955_s24, 9 }
 0x12d   : > { %s634_s28 = sshll.u32 %s282_s27, 4  ;;  %s1141_s17 = scalar_lea.hbm %s1195_s6, %s1199_s11  ;;  %s1134_s28 = int_to_ptr.vmem [resolvable:$true] %s634_s28 }
 0x12e   : > { %v461_v3 = vpop.permute.xlu1 %460  ;;  %s601_s19 = scalar_lea.sflag [#allocation5], %s1091_s18  ;;  %s883_s20 = scalar_lea.vmem %s1134_s28, 512 }
 0x12f   : > { %p884_p0 = scmp.ne.s32.totalorder %s1134_s28, %s883_s20  ;;  %s970_s30 = smov [#allocation4]  }
 0x130   : > { %s887_s8 = sshll.u32 %s970_s30, 4  ;;  %s888_s8 = int_to_ptr.vmem [resolvable:$false] %s887_s8 }
 0x131   : > { %p885_p1 = pnand %p884_p0, %p1046_p4  ;;  %s889_s14 = scalar_lea.vmem %s888_s8, 1024 }
 0x132   : > { %p890_p3 = scmp.lt.s32.totalorder %s1134_s28, %s888_s8  ;;  %p891_p5 = scmp.lt.s32.totalorder %s889_s14, %s883_s20 }
 0x133   : > { %p886_p2 = pneg %p885_p1 }
 0x134   : > { %p892_p6 = por %p891_p5, %p890_p3 }
 0x136   : > { %p893_p7 = pnand %p892_p6, %p886_p2 }
 0x1ae   : > { %v536_v63 = vpop.f32.mrf.mxu1 }
 0x1af   : > { %v537_v0 = vadd.f32 %v536_v63, %v456_v62 }
 0x1b0   : > { %v538_v1 = vpop.f32.mrf.mxu1 }
 0x1b1   : > { %v539_v2 = vadd.f32 %v538_v1, %v456_v62  ;;  %v547_v5 = vmax.f32 %v537_v0, 0.0 }
 0x1b2   : > { %v542_v4 = vpop.f32.mrf.mxu1 }
 0x1b3   : > { %v543_v6 = vadd.f32 %v542_v4, %v461_v3  ;;  %v548_v8 = vmax.f32 %v539_v2, 0.0  ;;  %v551_v11 = vmul.f32 %v547_v5, %v547_v5 }
 0x1b4   : > { %v544_v7 = vpop.f32.mrf.mxu1 }
 0x1b5   : > { %v549_v9 = vmax.f32 %v543_v6, 0.0  ;;  %v545_v10 = vadd.f32 %v544_v7, %v461_v3  ;;  %v552_v14 = vmul.f32 %v548_v8, %v548_v8 }
 0x1b7   : > { %v553_v12 = vmul.f32 %v549_v9, %v549_v9  ;;  %v550_v13 = vmax.f32 %v545_v10, 0.0 }
 0x1b9   : > { %v555_v15 = vadd.f32 %v553_v12, %v551_v11  ;;  %v554_v16 = vmul.f32 %v550_v13, %v550_v13 }
 0x1bb   : > { %v556_v17 = vrot.slane %v555_v15, 4  ;;  %v562_v18 = vadd.f32 %v554_v16, %v552_v14 }
 0x1bd   : > { %v557_v19 = vadd.f32 %v556_v17, %v555_v15  ;;  %v563_v20 = vrot.slane %v562_v18, 4 }
 0x1bf   : > { %v558_v21 = vrot.slane %v557_v19, 2  ;;  %v564_v22 = vadd.f32 %v563_v20, %v562_v18 }
 0x1c1   : > { %v559_v23 = vadd.f32 %v558_v21, %v557_v19  ;;  %v565_v24 = vrot.slane %v564_v22, 2 }
 0x1c3   : > { %v560_v25 = vrot.slane %v559_v23, 1  ;;  %v566_v26 = vadd.f32 %v565_v24, %v564_v22 }
 0x1c5   : > { %v561_v27 = vadd.f32 %v560_v25, %v559_v23  ;;  %v567_v28 = vrot.slane %v566_v26, 1 }
 0x1c7   : > { %849 = vrsqrt.f32 %v561_v27  ;;  %v568_v29 = vadd.f32 %v567_v28, %v566_v26  ;;  %vm571_vm7 = vcmp.eq.f32.partialorder %v561_v27, inf  ;;  %v574_v32 = vand.u32 2147483648, %v561_v27 }
 0x1c8   : > { %vm573_vm8 = vcmp.eq.f32.partialorder %v561_v27, 0.0 }
 0x1c9   : > { %851 = vrsqrt.f32 %v568_v29  ;;  %vm578_vm9 = vcmp.eq.f32.partialorder %v568_v29, inf  ;;  %v581_v38 = vand.u32 2147483648, %v568_v29  ;;  %vm580_vm10 = vcmp.eq.f32.partialorder %v568_v29, 0.0 }
 0x1d4   : > { %v850_v30 = vpop.eup %849 }
 0x1d5   : > { %v570_v31 = vmul.f32 %v850_v30, %v561_v27 }
 0x1d6   : > { %v852_v33 = vpop.eup %851 }
 0x1d7   : > { %v572_v34 = vsel %vm571_vm7, %v561_v27, %v570_v31  ;;  %v577_v36 = vmul.f32 %v852_v33, %v568_v29 }
 0x1d8   : > { %v575_v35 = vsel %vm573_vm8, %v574_v32, %v572_v34 }
 0x1d9   : > { %v583_v37 = vadd.f32 1e-10, %v575_v35  ;;  %v579_v39 = vsel %vm578_vm9, %v568_v29, %v577_v36 }
 0x1da   : > { %v582_v40 = vsel %vm580_vm10, %v581_v38, %v579_v39 }
 0x1db   : > { %853 = vrcp.f32 %v583_v37  ;;  %v584_v41 = vadd.f32 1e-10, %v582_v40 }
 0x1dd   : > { %855 = vrcp.f32 %v584_v41 }
 0x1e8   : > { %v854_v42 = vpop.eup %853 }
 0x1e9   : > { %v587_v43 = vmul.f32 %v854_v42, %v547_v5  ;;  %v589_v44 = vmul.f32 %v854_v42, %v549_v9 }
 0x1ea   : > { %v856_v45 = vpop.eup %855 }
 0x1eb   : > { %591 = vst [vmem:[%s282_s27] sm:$0xff] %v587_v43  ;;  %593 = vst [vmem:[%s282_s27 + $0x10] sm:$0xff] %v589_v44  ;;  %v590_v46 = vmul.f32 %v856_v45, %v550_v13  ;;  %v588_v47 = vmul.f32 %v856_v45, %v548_v8 }
 0x1ed   : > { %594 = vst [vmem:[%s282_s27 + $0x18] sm:$0xff] %v590_v46  ;;  %592 = vst [vmem:[%s282_s27 + $0x8] sm:$0xff] %v588_v47 }
 0x1ee   : > { %896 = shalt.err (!%p893_p7)
}
 0x1ef   : > { %s897_s24 = scalar_lea.hbm %s1141_s17, 512  ;;  %s901_s11 = scalar_lea.hbm %s1195_s6, 1024 }
 0x1f0   : > { %p898_p9 = scmp.ne.s32.totalorder %s1141_s17, %s897_s24  ;;  %p902_p12 = scmp.lt.s32.totalorder %s1141_s17, %s1195_s6 }
 0x1f1   : > { %p903_p13 = scmp.lt.s32.totalorder %s901_s11, %s897_s24 }
 0x1f2   : > { %p899_p10 = pnand %p898_p9, %p1046_p4 }
 0x1f3   : > { %p904_p0 = por %p903_p13, %p902_p12 }
 0x1f4   : > { %p900_p11 = pneg %p899_p10 }
 0x1f6   : > { %p905_p1 = pnand %p904_p0, %p900_p11 }
 0x1f8   : > { %908 = shalt.err (!%p905_p1)
}
 0x1f9   : > { %775 = dma.vmem_to_hbm [thread:$0]  (%p1046_p4), %s1134_s28, 512, %s1141_s17, %s601_s19, %s968_s13, %s968_s13, %s969_s15  }
 0x1fa PF: > { %p785_p2 = scmp.ge.s32.totalorder %s963_s26, 2  ;;  %s649_s20 = sand.u32 1, %s943_s21  }
 0x1fb   : > { %s650_s30 = scalar_lea.sflag [#allocation3], %s649_s20 }
 0x1fc   : > { %p779_p3 = pnand %p785_p2, %p1053_p8 }
 0x1fe   : > { %p780_p5 = pneg %p779_p3 }
 0x200   : > { %934 = dma.done.wait (%p780_p5), %s650_s30, 512  }
 0x201   : > { %936 = vsyncadd (%p780_p5), %s650_s30, 4294966784  ;;  %s659_s8 = scalar_lea.sflag [#allocation5], %s649_s20 }
 0x202   : > { %938 = dma.done.wait (%p780_p5), %s659_s8, 512  }
 0x203   : > { %940 = vsyncadd (%p780_p5), %s659_s8, 4294966784  ;;  %s23_s26 = sadd.s32 1, %s963_s26   ;;  %s1200_s21 = smov %s947_s22 }
 0x204   : > { %p20_p6 = scmp.ge.s32.totalorder %s23_s26, 4   ;;  %s1201_s22 = smov %s951_s23 }
 0x205   : > { %s1202_s23 = smov %s1059_s10  ;;  %s1203_s24 = smov %s959_s25 }
 0x206   : > { %s1204_s25 = smov %s1206_s29  ;;  %22 = sbr.rel (!%p20_p6) target bundleno = 6 (0x6), region = 92 }
 0x20b   :  { %664 = vsyncpa [#allocation3], 1 }
 0x20c   :  { %666 = vsyncpa [#allocation3 + $0x1], 1 }
 0x20d   :  { %667 = vsyncpa [#allocation5], 1 }
 0x20e   :  { %669 = vsyncpa [#allocation5 + $0x1], 1 }

</bundles_post_ra>
